<compile_context>
chip_gen: v6e
topology: v6e:2x2x1
jax: 0.10.0
libtpu: 0.0.40
codegen_flags: <defaults>
</compile_context>

<pallas_src>
import jax
import jax.numpy as jnp
from jax import lax
from jax.experimental import pallas as pl
from jax.experimental.pallas import tpu as pltpu


# ----------------------------------------------------------------------------
# im2col glue (pure JAX pad/slice/stack/reshape; no transpose, no compute)
# ----------------------------------------------------------------------------
def im2col_nchw_T(x, kh, kw, stride, pad):
    """x: [N, C, H, W] -> patches [N, C*kh*kw, OH*OW]; k = (c, kh, kw) c-major."""
    N, C, H, W = x.shape
    xp = jnp.pad(x, ((0, 0), (0, 0), (pad, pad), (pad, pad)))
    OH = (H + 2 * pad - kh) // stride + 1
    OW = (W + 2 * pad - kw) // stride + 1
    pieces = []
    for i in range(kh):
        for j in range(kw):
            pieces.append(
                xp[:, :, i:i + stride * OH:stride, j:j + stride * OW:stride]
            )  # [N, C, OH, OW]
    p = jnp.stack(pieces, axis=2)                     # [N, C, kh*kw, OH, OW]
    return p.reshape(N, C * kh * kw, OH * OW), OH, OW  # [N, K, S]


# ----------------------------------------------------------------------------
# Fused Pallas kernel: conv(im2col matmul)+ReLU -> flatten -> Linear+ReLU -> Linear
# One grid step == one sample; everything stays in VMEM.
# ----------------------------------------------------------------------------
def _simsiam_fused_kernel(ptT_ref, wT_ref, cb_ref, pw3_ref, pb_ref, hw_ref,
                          hb_ref, o_ref):
    OC, S, P = pw3_ref.shape

    # --- backbone: conv as matmul on im2col patches, channel-major output ----
    # convT[c, s] = ReLU( sum_k wT[c, k] * patches[k, s] + b[c] )     [OC, S]
    patches = ptT_ref[0]                                              # [K, S]
    convT = jnp.dot(wT_ref[...], patches,
                    preferred_element_type=jnp.float32) + cb_ref[...]
    convT = jnp.maximum(convT, 0.0)                                   # [OC, S]

    # --- flatten + projection_head (fused, no reshape/transpose) -------------
    # NCHW-flattened feature index is c*S + s, hence
    #   proj_pre[p] = sum_{c,s} convT[c, s] * proj_w[c*S + s, p]
    #               = sum_c  convT[c, :] @ pw3[c]        (K-split of the matmul)
    # Row c of (convT @ pw3[c]) is exactly convT[c, :] @ pw3[c]; select it with
    # a sublane one-hot mask and reduce -- flatten costs zero data movement.
    row_ids = lax.broadcasted_iota(jnp.int32, (OC, 1), 0)
    acc = jnp.zeros((OC, P), jnp.float32)
    for c in range(OC):                                               # static unroll
        m = jnp.dot(convT, pw3_ref[c], preferred_element_type=jnp.float32)
        acc = acc + jnp.where(row_ids == c, m, 0.0)
    proj = jnp.sum(acc, axis=0, keepdims=True) + pb_ref[...]          # [1, P]
    proj = jnp.maximum(proj, 0.0)

    # --- head -----------------------------------------------------------------
    # Broadcast to 8 sublanes so the MXU sees an aligned M; all rows are
    # identical, so a max-reduce recovers the single output row.
    proj8 = jnp.broadcast_to(proj, (8, P))                            # [8, P]
    out8 = jnp.dot(proj8, hw_ref[...], preferred_element_type=jnp.float32)
    out = jnp.max(out8, axis=0, keepdims=True) + hb_ref[...]          # [1, O]
    o_ref[...] = out[None].astype(o_ref.dtype)                        # [1, 1, O]


def simsiam_forward(x, params):
    """x: [N, C, H, W] (NCHW, like PyTorch). Returns [N, out_dim]."""
    N = x.shape[0]
    conv_w = params["conv_w"]                     # [OC, IC, KH, KW]
    OC, IC, KH, KW = conv_w.shape

    # im2col glue (no runtime transpose).
    ptT, OH, OW = im2col_nchw_T(x, KH, KW, stride=2, pad=1)   # [N, K, S]
    K = IC * KH * KW
    S = OH * OW

    # Trace-time weight reshapes (zero extra work inside the kernel).
    wT = conv_w.reshape(OC, K)                    # [OC, K]
    cb = params["conv_b"].reshape(OC, 1)          # [OC, 1]
    proj_w = params["proj_w"]                     # [OC*S, P], rows in NCHW order
    assert proj_w.shape[0] == OC * S, (proj_w.shape, OC, S)
    P = proj_w.shape[1]
    pw3 = proj_w.reshape(OC, S, P)                # pw3[c, s, :] == proj_w[c*S+s, :]
    pb = params["proj_b"].reshape(1, P)
    hw = params["head_w"]                         # [P, O]
    O = hw.shape[1]
    hb = params["head_b"].reshape(1, O)

    flops = N * (2 * OC * K * S + OC * 2 * OC * S * P + 2 * 8 * P * O)
    bytes_accessed = 4 * (ptT.size + wT.size + cb.size + pw3.size
                          + pb.size + hw.size + hb.size + N * O)

    out3 = pl.pallas_call(
        _simsiam_fused_kernel,
        out_shape=jax.ShapeDtypeStruct((N, 1, O), jnp.float32),
        grid=(N,),
        in_specs=[
            pl.BlockSpec((1, K, S), lambda n: (n, 0, 0)),    # per-sample patches
            pl.BlockSpec((OC, K), lambda n: (0, 0)),         # conv weight (resident)
            pl.BlockSpec((OC, 1), lambda n: (0, 0)),         # conv bias
            pl.BlockSpec((OC, S, P), lambda n: (0, 0, 0)),   # proj weight (resident)
            pl.BlockSpec((1, P), lambda n: (0, 0)),          # proj bias
            pl.BlockSpec((P, O), lambda n: (0, 0)),          # head weight
            pl.BlockSpec((1, O), lambda n: (0, 0)),          # head bias
        ],
        out_specs=pl.BlockSpec((1, 1, O), lambda n: (n, 0, 0)),
        compiler_params=pltpu.CompilerParams(
            dimension_semantics=("parallel",)),               # v7x: 2 TCs split batch
        cost_estimate=pl.CostEstimate(
            flops=int(flops), transcendentals=0,
            bytes_accessed=int(bytes_accessed)),
    )(ptT, wT, cb, pw3, pb, hw, hb)
    return out3.reshape(N, O)


# ----------------------------------------------------------------------------
# Pure-JAX reference (PyTorch semantics) for a correctness check
# ----------------------------------------------------------------------------
def reference_forward(x, params):
    N = x.shape[0]
    conv_w = params["conv_w"]
    OC, IC, KH, KW = conv_w.shape
    ptT, OH, OW = im2col_nchw_T(x, KH, KW, stride=2, pad=1)        # [N, K, S]
    w = conv_w.reshape(OC, IC * KH * KW)
    conv = jnp.einsum("ok,nks->nos", w, ptT) + params["conv_b"][None, :, None]
    conv = jnp.maximum(conv, 0.0)                                   # [N, OC, S]
    feats = conv.reshape(N, -1)                                     # NCHW flatten
    proj = jnp.maximum(feats @ params["proj_w"] + params["proj_b"], 0.0)
    return proj @ params["head_w"] + params["head_b"]


# ----------------------------------------------------------------------------
# Deterministic parameter construction
# ----------------------------------------------------------------------------
def make_params(key, in_c=4, conv_c=8, feat_dim=512, proj_dim=64, out_dim=32):
    k0, k1, k2, _ = jax.random.split(key, 4)
    return {
        "conv_w": 0.05 * jax.random.normal(k0, (conv_c, in_c, 3, 3), jnp.float32),
        "conv_b": jnp.zeros((conv_c,), jnp.float32),
        "proj_w": 0.05 * jax.random.normal(k1, (feat_dim, proj_dim), jnp.float32),
        "proj_b": 0.01 * jnp.ones((proj_dim,), jnp.float32),
        "head_w": 0.05 * jax.random.normal(k2, (proj_dim, out_dim), jnp.float32),
        "head_b": 0.01 * jnp.ones((out_dim,), jnp.float32),
    }


if __name__ == "__main__":
    key = jax.random.PRNGKey(0)
    kx, kp = jax.random.split(key)

    # Small shapes: batch=2, channels=4, spatial=16x16 (NCHW, like PyTorch).
    x = jax.random.normal(kx, (2, 4, 16, 16), jnp.float32)
    params = make_params(kp)

    fwd = jax.jit(simsiam_forward)
    out = jax.block_until_ready(fwd(x, params))
    assert out.shape == (2, 32), out.shape
    assert bool(jnp.all(jnp.isfinite(out)))

    ref = reference_forward(x, params)
    assert bool(jnp.allclose(out, ref, rtol=1e-3, atol=1e-3)), (
        float(jnp.max(jnp.abs(out - ref))))
    print("KERNEL_OK")
</pallas_src>

<mosaic_0001>
module attributes {stable_mosaic.version = 11 : i64} {
  func.func @_simsiam_fused_kernel(%arg0: i32, %arg1: memref<1x36x64xf32, #tpu.memory_space<vmem>>, %arg2: memref<8x36xf32, #tpu.memory_space<vmem>>, %arg3: memref<8x1xf32, #tpu.memory_space<vmem>>, %arg4: memref<8x64x64xf32, #tpu.memory_space<vmem>>, %arg5: memref<1x64xf32, #tpu.memory_space<vmem>>, %arg6: memref<64x32xf32, #tpu.memory_space<vmem>>, %arg7: memref<1x32xf32, #tpu.memory_space<vmem>>, %arg8: memref<1x1x32xf32, #tpu.memory_space<vmem>>) attributes {dimension_semantics = [#tpu.dimension_semantics<parallel>], iteration_bounds = array<i64: 2>, scalar_prefetch = 0 : i64, scratch_operands = 0 : i64, tpu.core_type = #tpu.core_type<tc>, window_params = [{transform_indices = @transform_0, window_bounds = array<i64: 1, 36, 64>}, {pipeline_mode = #tpu.pipeline_mode<synchronous>, transform_indices = @transform_1, window_bounds = array<i64: 8, 36>}, {pipeline_mode = #tpu.pipeline_mode<synchronous>, transform_indices = @transform_2, window_bounds = array<i64: 8, 1>}, {pipeline_mode = #tpu.pipeline_mode<synchronous>, transform_indices = @transform_3, window_bounds = array<i64: 8, 64, 64>}, {pipeline_mode = #tpu.pipeline_mode<synchronous>, transform_indices = @transform_4, window_bounds = array<i64: 1, 64>}, {pipeline_mode = #tpu.pipeline_mode<synchronous>, transform_indices = @transform_5, window_bounds = array<i64: 64, 32>}, {pipeline_mode = #tpu.pipeline_mode<synchronous>, transform_indices = @transform_6, window_bounds = array<i64: 1, 32>}, {transform_indices = @transform_7, window_bounds = array<i64: 1, 1, 32>}]} {
    %c0 = arith.constant 0 : index
    %c0_0 = arith.constant 0 : index
    %c0_1 = arith.constant 0 : index
    %0 = vector.load %arg1[%c0, %c0_0, %c0_1] : memref<1x36x64xf32, #tpu.memory_space<vmem>>, vector<1x36x64xf32>
    %1 = vector.shape_cast %0 : vector<1x36x64xf32> to vector<36x64xf32>
    %c0_2 = arith.constant 0 : index
    %c0_3 = arith.constant 0 : index
    %2 = vector.load %arg2[%c0_2, %c0_3] : memref<8x36xf32, #tpu.memory_space<vmem>>, vector<8x36xf32>
    %cst = arith.constant dense<0.000000e+00> : vector<8x64xf32>
    %3 = tpu.matmul %2, %1, %cst {dimension_numbers = #tpu.dot_dimension_numbers<[1], [0], [0], [1], [0, 0, 1, 1], [], []>} : vector<8x36xf32>, vector<36x64xf32>, vector<8x64xf32> -> vector<8x64xf32>
    %c0_4 = arith.constant 0 : index
    %c0_5 = arith.constant 0 : index
    %4 = vector.load %arg3[%c0_4, %c0_5] : memref<8x1xf32, #tpu.memory_space<vmem>>, vector<8x1xf32>
    %5 = vector.broadcast %4 : vector<8x1xf32> to vector<8x64xf32>
    %6 = arith.addf %3, %5 : vector<8x64xf32>
    %cst_6 = arith.constant 0.000000e+00 : f32
    %7 = vector.broadcast %cst_6 : f32 to vector<8x64xf32>
    %8 = arith.maximumf %6, %7 : vector<8x64xf32>
    %9 = tpu.iota {dimensions = array<i32: 0>} : vector<8x1xi32>
    %cst_7 = arith.constant 0.000000e+00 : f32
    %10 = vector.broadcast %cst_7 : f32 to vector<8x64xf32>
    %c0_8 = arith.constant 0 : index
    %c0_9 = arith.constant 0 : index
    %c0_10 = arith.constant 0 : index
    %11 = vector.load %arg4[%c0_8, %c0_9, %c0_10] : memref<8x64x64xf32, #tpu.memory_space<vmem>>, vector<1x64x64xf32>
    %12 = vector.shape_cast %11 : vector<1x64x64xf32> to vector<64x64xf32>
    %cst_11 = arith.constant dense<0.000000e+00> : vector<8x64xf32>
    %13 = tpu.matmul %8, %12, %cst_11 {dimension_numbers = #tpu.dot_dimension_numbers<[1], [0], [0], [1], [0, 0, 1, 1], [], []>} : vector<8x64xf32>, vector<64x64xf32>, vector<8x64xf32> -> vector<8x64xf32>
    %c0_i32 = arith.constant 0 : i32
    %14 = vector.broadcast %c0_i32 : i32 to vector<8x1xi32>
    %15 = arith.cmpi eq, %9, %14 : vector<8x1xi32>
    %cst_12 = arith.constant 0.000000e+00 : f32
    %16 = vector.shape_cast %15 : vector<8x1xi1> to vector<8x1xi1>
    %17 = vector.broadcast %16 : vector<8x1xi1> to vector<8x64xi1>
    %18 = vector.broadcast %cst_12 : f32 to vector<8x64xf32>
    %19 = arith.select %17, %13, %18 : vector<8x64xi1>, vector<8x64xf32>
    %20 = arith.addf %10, %19 : vector<8x64xf32>
    %c1 = arith.constant 1 : index
    %c0_13 = arith.constant 0 : index
    %c0_14 = arith.constant 0 : index
    %21 = vector.load %arg4[%c1, %c0_13, %c0_14] : memref<8x64x64xf32, #tpu.memory_space<vmem>>, vector<1x64x64xf32>
    %22 = vector.shape_cast %21 : vector<1x64x64xf32> to vector<64x64xf32>
    %cst_15 = arith.constant dense<0.000000e+00> : vector<8x64xf32>
    %23 = tpu.matmul %8, %22, %cst_15 {dimension_numbers = #tpu.dot_dimension_numbers<[1], [0], [0], [1], [0, 0, 1, 1], [], []>} : vector<8x64xf32>, vector<64x64xf32>, vector<8x64xf32> -> vector<8x64xf32>
    %c1_i32 = arith.constant 1 : i32
    %24 = vector.broadcast %c1_i32 : i32 to vector<8x1xi32>
    %25 = arith.cmpi eq, %9, %24 : vector<8x1xi32>
    %cst_16 = arith.constant 0.000000e+00 : f32
    %26 = vector.shape_cast %25 : vector<8x1xi1> to vector<8x1xi1>
    %27 = vector.broadcast %26 : vector<8x1xi1> to vector<8x64xi1>
    %28 = vector.broadcast %cst_16 : f32 to vector<8x64xf32>
    %29 = arith.select %27, %23, %28 : vector<8x64xi1>, vector<8x64xf32>
    %30 = arith.addf %20, %29 : vector<8x64xf32>
    %c2 = arith.constant 2 : index
    %c0_17 = arith.constant 0 : index
    %c0_18 = arith.constant 0 : index
    %31 = vector.load %arg4[%c2, %c0_17, %c0_18] : memref<8x64x64xf32, #tpu.memory_space<vmem>>, vector<1x64x64xf32>
    %32 = vector.shape_cast %31 : vector<1x64x64xf32> to vector<64x64xf32>
    %cst_19 = arith.constant dense<0.000000e+00> : vector<8x64xf32>
    %33 = tpu.matmul %8, %32, %cst_19 {dimension_numbers = #tpu.dot_dimension_numbers<[1], [0], [0], [1], [0, 0, 1, 1], [], []>} : vector<8x64xf32>, vector<64x64xf32>, vector<8x64xf32> -> vector<8x64xf32>
    %c2_i32 = arith.constant 2 : i32
    %34 = vector.broadcast %c2_i32 : i32 to vector<8x1xi32>
    %35 = arith.cmpi eq, %9, %34 : vector<8x1xi32>
    %cst_20 = arith.constant 0.000000e+00 : f32
    %36 = vector.shape_cast %35 : vector<8x1xi1> to vector<8x1xi1>
    %37 = vector.broadcast %36 : vector<8x1xi1> to vector<8x64xi1>
    %38 = vector.broadcast %cst_20 : f32 to vector<8x64xf32>
    %39 = arith.select %37, %33, %38 : vector<8x64xi1>, vector<8x64xf32>
    %40 = arith.addf %30, %39 : vector<8x64xf32>
    %c3 = arith.constant 3 : index
    %c0_21 = arith.constant 0 : index
    %c0_22 = arith.constant 0 : index
    %41 = vector.load %arg4[%c3, %c0_21, %c0_22] : memref<8x64x64xf32, #tpu.memory_space<vmem>>, vector<1x64x64xf32>
    %42 = vector.shape_cast %41 : vector<1x64x64xf32> to vector<64x64xf32>
    %cst_23 = arith.constant dense<0.000000e+00> : vector<8x64xf32>
    %43 = tpu.matmul %8, %42, %cst_23 {dimension_numbers = #tpu.dot_dimension_numbers<[1], [0], [0], [1], [0, 0, 1, 1], [], []>} : vector<8x64xf32>, vector<64x64xf32>, vector<8x64xf32> -> vector<8x64xf32>
    %c3_i32 = arith.constant 3 : i32
    %44 = vector.broadcast %c3_i32 : i32 to vector<8x1xi32>
    %45 = arith.cmpi eq, %9, %44 : vector<8x1xi32>
    %cst_24 = arith.constant 0.000000e+00 : f32
    %46 = vector.shape_cast %45 : vector<8x1xi1> to vector<8x1xi1>
    %47 = vector.broadcast %46 : vector<8x1xi1> to vector<8x64xi1>
    %48 = vector.broadcast %cst_24 : f32 to vector<8x64xf32>
    %49 = arith.select %47, %43, %48 : vector<8x64xi1>, vector<8x64xf32>
    %50 = arith.addf %40, %49 : vector<8x64xf32>
    %c4 = arith.constant 4 : index
    %c0_25 = arith.constant 0 : index
    %c0_26 = arith.constant 0 : index
    %51 = vector.load %arg4[%c4, %c0_25, %c0_26] : memref<8x64x64xf32, #tpu.memory_space<vmem>>, vector<1x64x64xf32>
    %52 = vector.shape_cast %51 : vector<1x64x64xf32> to vector<64x64xf32>
    %cst_27 = arith.constant dense<0.000000e+00> : vector<8x64xf32>
    %53 = tpu.matmul %8, %52, %cst_27 {dimension_numbers = #tpu.dot_dimension_numbers<[1], [0], [0], [1], [0, 0, 1, 1], [], []>} : vector<8x64xf32>, vector<64x64xf32>, vector<8x64xf32> -> vector<8x64xf32>
    %c4_i32 = arith.constant 4 : i32
    %54 = vector.broadcast %c4_i32 : i32 to vector<8x1xi32>
    %55 = arith.cmpi eq, %9, %54 : vector<8x1xi32>
    %cst_28 = arith.constant 0.000000e+00 : f32
    %56 = vector.shape_cast %55 : vector<8x1xi1> to vector<8x1xi1>
    %57 = vector.broadcast %56 : vector<8x1xi1> to vector<8x64xi1>
    %58 = vector.broadcast %cst_28 : f32 to vector<8x64xf32>
    %59 = arith.select %57, %53, %58 : vector<8x64xi1>, vector<8x64xf32>
    %60 = arith.addf %50, %59 : vector<8x64xf32>
    %c5 = arith.constant 5 : index
    %c0_29 = arith.constant 0 : index
    %c0_30 = arith.constant 0 : index
    %61 = vector.load %arg4[%c5, %c0_29, %c0_30] : memref<8x64x64xf32, #tpu.memory_space<vmem>>, vector<1x64x64xf32>
    %62 = vector.shape_cast %61 : vector<1x64x64xf32> to vector<64x64xf32>
    %cst_31 = arith.constant dense<0.000000e+00> : vector<8x64xf32>
    %63 = tpu.matmul %8, %62, %cst_31 {dimension_numbers = #tpu.dot_dimension_numbers<[1], [0], [0], [1], [0, 0, 1, 1], [], []>} : vector<8x64xf32>, vector<64x64xf32>, vector<8x64xf32> -> vector<8x64xf32>
    %c5_i32 = arith.constant 5 : i32
    %64 = vector.broadcast %c5_i32 : i32 to vector<8x1xi32>
    %65 = arith.cmpi eq, %9, %64 : vector<8x1xi32>
    %cst_32 = arith.constant 0.000000e+00 : f32
    %66 = vector.shape_cast %65 : vector<8x1xi1> to vector<8x1xi1>
    %67 = vector.broadcast %66 : vector<8x1xi1> to vector<8x64xi1>
    %68 = vector.broadcast %cst_32 : f32 to vector<8x64xf32>
    %69 = arith.select %67, %63, %68 : vector<8x64xi1>, vector<8x64xf32>
    %70 = arith.addf %60, %69 : vector<8x64xf32>
    %c6 = arith.constant 6 : index
    %c0_33 = arith.constant 0 : index
    %c0_34 = arith.constant 0 : index
    %71 = vector.load %arg4[%c6, %c0_33, %c0_34] : memref<8x64x64xf32, #tpu.memory_space<vmem>>, vector<1x64x64xf32>
    %72 = vector.shape_cast %71 : vector<1x64x64xf32> to vector<64x64xf32>
    %cst_35 = arith.constant dense<0.000000e+00> : vector<8x64xf32>
    %73 = tpu.matmul %8, %72, %cst_35 {dimension_numbers = #tpu.dot_dimension_numbers<[1], [0], [0], [1], [0, 0, 1, 1], [], []>} : vector<8x64xf32>, vector<64x64xf32>, vector<8x64xf32> -> vector<8x64xf32>
    %c6_i32 = arith.constant 6 : i32
    %74 = vector.broadcast %c6_i32 : i32 to vector<8x1xi32>
    %75 = arith.cmpi eq, %9, %74 : vector<8x1xi32>
    %cst_36 = arith.constant 0.000000e+00 : f32
    %76 = vector.shape_cast %75 : vector<8x1xi1> to vector<8x1xi1>
    %77 = vector.broadcast %76 : vector<8x1xi1> to vector<8x64xi1>
    %78 = vector.broadcast %cst_36 : f32 to vector<8x64xf32>
    %79 = arith.select %77, %73, %78 : vector<8x64xi1>, vector<8x64xf32>
    %80 = arith.addf %70, %79 : vector<8x64xf32>
    %c7 = arith.constant 7 : index
    %c0_37 = arith.constant 0 : index
    %c0_38 = arith.constant 0 : index
    %81 = vector.load %arg4[%c7, %c0_37, %c0_38] : memref<8x64x64xf32, #tpu.memory_space<vmem>>, vector<1x64x64xf32>
    %82 = vector.shape_cast %81 : vector<1x64x64xf32> to vector<64x64xf32>
    %cst_39 = arith.constant dense<0.000000e+00> : vector<8x64xf32>
    %83 = tpu.matmul %8, %82, %cst_39 {dimension_numbers = #tpu.dot_dimension_numbers<[1], [0], [0], [1], [0, 0, 1, 1], [], []>} : vector<8x64xf32>, vector<64x64xf32>, vector<8x64xf32> -> vector<8x64xf32>
    %c7_i32 = arith.constant 7 : i32
    %84 = vector.broadcast %c7_i32 : i32 to vector<8x1xi32>
    %85 = arith.cmpi eq, %9, %84 : vector<8x1xi32>
    %cst_40 = arith.constant 0.000000e+00 : f32
    %86 = vector.shape_cast %85 : vector<8x1xi1> to vector<8x1xi1>
    %87 = vector.broadcast %86 : vector<8x1xi1> to vector<8x64xi1>
    %88 = vector.broadcast %cst_40 : f32 to vector<8x64xf32>
    %89 = arith.select %87, %83, %88 : vector<8x64xi1>, vector<8x64xf32>
    %90 = arith.addf %80, %89 : vector<8x64xf32>
    %cst_41 = arith.constant dense<0.000000e+00> : vector<64xf32>
    %91 = vector.multi_reduction <add>, %90, %cst_41 [0] : vector<8x64xf32> to vector<64xf32>
    %92 = vector.shape_cast %91 : vector<64xf32> to vector<1x64xf32>
    %c0_42 = arith.constant 0 : index
    %c0_43 = arith.constant 0 : index
    %93 = vector.load %arg5[%c0_42, %c0_43] : memref<1x64xf32, #tpu.memory_space<vmem>>, vector<1x64xf32>
    %94 = arith.addf %92, %93 : vector<1x64xf32>
    %cst_44 = arith.constant 0.000000e+00 : f32
    %95 = vector.broadcast %cst_44 : f32 to vector<1x64xf32>
    %96 = arith.maximumf %94, %95 : vector<1x64xf32>
    %97 = vector.shape_cast %96 : vector<1x64xf32> to vector<1x64xf32>
    %98 = vector.broadcast %97 : vector<1x64xf32> to vector<8x64xf32>
    %c0_45 = arith.constant 0 : index
    %c0_46 = arith.constant 0 : index
    %99 = vector.load %arg6[%c0_45, %c0_46] : memref<64x32xf32, #tpu.memory_space<vmem>>, vector<64x32xf32>
    %cst_47 = arith.constant dense<0.000000e+00> : vector<8x32xf32>
    %100 = tpu.matmul %98, %99, %cst_47 {dimension_numbers = #tpu.dot_dimension_numbers<[1], [0], [0], [1], [0, 0, 1, 1], [], []>} : vector<8x64xf32>, vector<64x32xf32>, vector<8x32xf32> -> vector<8x32xf32>
    %cst_48 = arith.constant dense<0xFF800000> : vector<32xf32>
    %101 = vector.multi_reduction <maximumf>, %100, %cst_48 [0] : vector<8x32xf32> to vector<32xf32>
    %102 = vector.shape_cast %101 : vector<32xf32> to vector<1x32xf32>
    %c0_49 = arith.constant 0 : index
    %c0_50 = arith.constant 0 : index
    %103 = vector.load %arg7[%c0_49, %c0_50] : memref<1x32xf32, #tpu.memory_space<vmem>>, vector<1x32xf32>
    %104 = arith.addf %102, %103 : vector<1x32xf32>
    %105 = vector.shape_cast %104 : vector<1x32xf32> to vector<1x1x32xf32>
    %c0_51 = arith.constant 0 : index
    %c0_52 = arith.constant 0 : index
    %c0_53 = arith.constant 0 : index
    %106 = vector.load %arg8[%c0_51, %c0_52, %c0_53] : memref<1x1x32xf32, #tpu.memory_space<vmem>>, vector<1x1x32xf32>
    tpu.vector_store %arg8[%c0_51, %c0_52, %c0_53], %105 {strides = array<i32>} : memref<1x1x32xf32, #tpu.memory_space<vmem>>, vector<1x1x32xf32>,
    return
  }
  func.func @transform_0(%arg0: i32) -> (i32, i32, i32) {
    %c0_i32 = arith.constant 0 : i32
    %c0_i32_0 = arith.constant 0 : i32
    %c0_i32_1 = arith.constant 0 : i32
    return %arg0, %c0_i32, %c0_i32_0 : i32, i32, i32
  }
  func.func @transform_1(%arg0: i32) -> (i32, i32) {
    %c0_i32 = arith.constant 0 : i32
    %c0_i32_0 = arith.constant 0 : i32
    %c0_i32_1 = arith.constant 0 : i32
    return %c0_i32, %c0_i32_0 : i32, i32
  }
  func.func @transform_2(%arg0: i32) -> (i32, i32) {
    %c0_i32 = arith.constant 0 : i32
    %c0_i32_0 = arith.constant 0 : i32
    %c0_i32_1 = arith.constant 0 : i32
    return %c0_i32, %c0_i32_0 : i32, i32
  }
  func.func @transform_3(%arg0: i32) -> (i32, i32, i32) {
    %c0_i32 = arith.constant 0 : i32
    %c0_i32_0 = arith.constant 0 : i32
    %c0_i32_1 = arith.constant 0 : i32
    %c0_i32_2 = arith.constant 0 : i32
    return %c0_i32, %c0_i32_0, %c0_i32_1 : i32, i32, i32
  }
  func.func @transform_4(%arg0: i32) -> (i32, i32) {
    %c0_i32 = arith.constant 0 : i32
    %c0_i32_0 = arith.constant 0 : i32
    %c0_i32_1 = arith.constant 0 : i32
    return %c0_i32, %c0_i32_0 : i32, i32
  }
  func.func @transform_5(%arg0: i32) -> (i32, i32) {
    %c0_i32 = arith.constant 0 : i32
    %c0_i32_0 = arith.constant 0 : i32
    %c0_i32_1 = arith.constant 0 : i32
    return %c0_i32, %c0_i32_0 : i32, i32
  }
  func.func @transform_6(%arg0: i32) -> (i32, i32) {
    %c0_i32 = arith.constant 0 : i32
    %c0_i32_0 = arith.constant 0 : i32
    %c0_i32_1 = arith.constant 0 : i32
    return %c0_i32, %c0_i32_0 : i32, i32
  }
  func.func @transform_7(%arg0: i32) -> (i32, i32, i32) {
    %c0_i32 = arith.constant 0 : i32
    %c0_i32_0 = arith.constant 0 : i32
    %c0_i32_1 = arith.constant 0 : i32
    return %arg0, %c0_i32, %c0_i32_0 : i32, i32, i32
  }
}

</mosaic_0001>

<bundles_post_ra>
// kernel: simsiam_forward.1
= control target key start
LH: loop header
LB: loop body
LE: loop exit
PB: predicated region body
PF: predicated region fallthrough
CT: control target
= control target key end

     0   :  { %12 = vsyncpa [#allocation3], 0  ;;  %s2147_s0 = inlined_call_operand.vmem [shape: f32[2,36,64], index: 0, kind: input, shape index: {}]   ;;  %s2148_s1 = inlined_call_operand.vmem [shape: f32[8,36], index: 1, kind: input, shape index: {}]   ;;  %s2149_s2 = inlined_call_operand.vmem [shape: f32[8,1], index: 2, kind: input, shape index: {}]   ;;  %s2150_s3 = inlined_call_operand.vmem [shape: f32[8,64,64], index: 3, kind: input, shape index: {}]   ;;  %s2151_s4 = inlined_call_operand.vmem [shape: f32[1,64], index: 4, kind: input, shape index: {}]   ;;  %s2152_s5 = inlined_call_operand.vmem [shape: f32[64,32], index: 5, kind: input, shape index: {}]   ;;  %s2153_s6 = inlined_call_operand.vmem [shape: f32[1,32], index: 6, kind: input, shape index: {}]   ;;  %s2154_s7 = inlined_call_operand.hbm [shape: f32[2,1,32], index: 7, kind: output, shape index: {}]  }
   0x1   :  { %14 = vsyncpa [#allocation3 + $0x1], 0  ;;  %s1715_s24 = smov 0   ;;  %s1717_s25 = smov 0  }
   0x2   :  { %s1719_s26 = smov 0   ;;  %s1721_s27 = smov 0  }
   0x3 LB: > { %s1736_s28 = sadd.s32 4294967295, %s1669_s27   ;;  %s1219_s29 = sadd.s32 4294967294, %s1669_s27   ;;  %s1669_s27 = sphi %s1721_s27, %s2160_s27   ;;  %s1665_s26 = sphi %s1719_s26, %s2159_s26   ;;  %s1661_s25 = sphi %s1717_s25, %s2158_s25   ;;  %s1657_s24 = sphi %s1715_s24, %s2157_s24  }
   0x4   : > { %s1740_s30 = sadd.s32 1, %s1669_s27   ;;  %s179_s8 = sadd.s32 1, %s1665_s26 }
   0x5   : > { %s176_s9 = ssub.s32 %s1669_s27, %s1740_s30  ;;  %p189_p0 = scmp.ne.s32.totalorder %s1665_s26, %s1661_s25 }
   0x6   : > { %p177_p1 = scmp.eq.s32.totalorder %s176_s9, 0  ;;  %p190_p2 = scmp.eq.s32.totalorder %s1736_s28, 1 }
   0x7   : > { %p195_p3 = scmp.ne.s32.totalorder %s1661_s25, %s1657_s24  ;;  %p196_p4 = scmp.eq.s32.totalorder %s1219_s29, 1 }
   0x8   : > { %s1751_s10 = scalar_select %p177_p1, %s1665_s26, %s179_s8  }
   0x9   : > { %p1753_p5 = por %p190_p2, %p189_p0  ;;  %p1757_p6 = por %p196_p4, %p195_p3 }
   0xa   : > { %p1222_p7 = scmp.ge.s32.totalorder %s1669_s27, 1  ;;  %p240_p8 = scmp.lt.s32.totalorder %s1669_s27, 3 }
   0xc   : > { %p241_p9 = pnand %p1222_p7, %p240_p8 }
   0xd   : > { %p271_p10 = scmp.lt.s32.totalorder (!%p241_p9), %s1736_s28, 1  ;;  %s269_s14 = sand.u32 (!%p241_p9), 1, %s1661_s25  }
   0xe   : > { %244 = sbr.rel (%p241_p9) target bundleno = 722 (0x2d2), region = 48  ;;  %s270_s18 = scalar_lea.vmem (!%p241_p9), [#allocation2], %s269_s14 }
   0xf   : > { %s1164_s19 = sshll.u32 (!%p241_p9), %s270_s18, 4  ;;  %s1152_s23 = scalar_lea.sflag (!%p241_p9), [#allocation3], %s269_s14  ;;  %s1165_s19 = int_to_ptr.vmem [resolvable:$true] %s1164_s19 }
  0x10   : > { %s1609_s29 = scalar_lea.vmem (!%p241_p9), %s1165_s19, 16 }
  0x11   : > { %p1610_p11 = scmp.ne.s32.totalorder (!%p241_p9), %s1165_s19, %s1609_s29 }
  0x13   : > { %v1671_v0 = vmov 0.0   ;;  %vm1672_vm0 = vmmov 0   ;;  %v282_v1 = vld [vmem:[%s2149_s2] sm:$0xff]  ;;  %v376_v2 = vld [vmem:[%s2150_s3 + $0x38] sm:$0xff]  ;;  %s272_s17 = scalar_select %p271_p10, %s1736_s28, 1  ;;  %v1673_v3 = vmov 0  }
  0x14   : > { %1381 = vmatprep.subr.mxu0 %v1671_v0  ;;  %1391 = vmatprep.mubr.msk.f32.mxu0 %vm1672_vm0, %v1671_v0  ;;  %v375_v4 = vld [vmem:[%s2150_s3 + $0x30] sm:$0xff]  ;;  %v374_v5 = vld [vmem:[%s2150_s3 + $0x28] sm:$0xff]  ;;  %vm292_vm1 = vcmask 1043456   ;;  %v373_v6 = vld [vmem:[%s2150_s3 + $0x20] sm:$0xff]  ;;  %vm288_vm2 = vcmask 293888   ;;  %vm377_vm3 = vcmask 523264   ;;  %p1611_p12 = pnand %p1610_p11, %p1753_p5 }
  0x15   : > { %1608 = vset.pattern.permute.xlu0 %v1673_v3  ;;  %1394 = vmatprep.subr.mxu1 %v1671_v0  ;;  %s1565_s20 = smul.u32 40, %s272_s17  ;;  %v372_v9 = vld [vmem:[%s2150_s3 + $0x18] sm:$0xff]  ;;  %v371_v11 = vld [vmem:[%s2150_s3 + $0x10] sm:$0xff]  ;;  %v281_v14 = vld [vmem:[%s2148_s1] sm:$0xff]  ;;  %vm1139_vm12 = vcmask 261120   ;;  %s1291_s17 = sshll.u32 %s1736_s28, 4 }
  0x16   : > { %285 = vperm.xlu0 %1608, %v282_v1   ;;  %1395 = vmatpush3.msra.mxu1 %v376_v2  ;;  %v1234_v15 = vld [vmem:[%s2150_s3 + $0x78] sm:$0xff]  ;;  %v1233_v16 = vld [vmem:[%s2150_s3 + $0x70] sm:$0xff]  ;;  %v1232_v17 = vld [vmem:[%s2150_s3 + $0x68] sm:$0xff]  ;;  %vm1149_vm13 = vcmask 253952   ;;  %s1162_s22 = scalar_lea.hbm %s2154_s7, %s1291_s17  ;;  %p1612_p13 = pneg %p1611_p12 }
  0x17   : > { %1396 = vmatprep.subr.mxu1 %v1671_v0  ;;  %1410 = vmatprep.mubr.msk.f32.mxu1 %vm1672_vm0, %v1671_v0  ;;  %s275_s8 = scalar_lea.vmem %s2147_s0, %s1565_s20  ;;  %v1231_v18 = vld [vmem:[%s2150_s3 + $0x60] sm:$0xff]  ;;  %v1230_v19 = vld [vmem:[%s2150_s3 + $0x58] sm:$0xff]  ;;  %v1229_v20 = vld [vmem:[%s2150_s3 + $0x50] sm:$0xff] }
  0x18   : > { %1397 = vmatpush3.msra.mxu1 %v375_v4  ;;  %v280_v7 = vld [vmem:[%s275_s8 + $0x20] sm:$0xf]  ;;  %v279_v8 = vld [vmem:[%s275_s8 + $0x18] sm:$0xff]  ;;  %v278_v10 = vld [vmem:[%s275_s8 + $0x10] sm:$0xff] }
  0x19   : > { %1398 = vmatprep.subr.mxu1 %v1671_v0  ;;  %1382 = vmatpush3.msk.msra.mxu0 %vm292_vm1, %v280_v7  ;;  %v277_v12 = vld [vmem:[%s275_s8 + $0x8] sm:$0xff]  ;;  %v276_v13 = vld [vmem:[%s275_s8] sm:$0xff]  ;;  %v1243_v30 = vld [vmem:[%s2150_s3 + $0xb8] sm:$0xff]  ;;  %s1674_s8 = smov [#allocation2]  }
  0x1a   : > { %1399 = vmatpush3.msra.mxu1 %v374_v5  ;;  %1383 = vmatprep.subr.mxu0 %v1671_v0  ;;  %v370_v21 = vld [vmem:[%s2150_s3 + $0x8] sm:$0xff]  ;;  %v369_v23 = vld [vmem:[%s2150_s3] sm:$0xff]  ;;  %v1252_v31 = vld [vmem:[%s2150_s3 + $0xf8] sm:$0xff]  ;;  %s1613_s9 = sshll.u32 %s1674_s8, 4  ;;  %s1614_s9 = int_to_ptr.vmem [resolvable:$false] %s1613_s9 }
  0x1b   : > { %1400 = vmatprep.subr.mxu1 %v1671_v0  ;;  %1384 = vmatpush3.msra.mxu0 %v279_v8  ;;  %v1228_v22 = vld [vmem:[%s2150_s3 + $0x48] sm:$0xff]  ;;  %v1227_v24 = vld [vmem:[%s2150_s3 + $0x40] sm:$0xff]  ;;  %v1242_v32 = vld [vmem:[%s2150_s3 + $0xb0] sm:$0xff]  ;;  %s1615_s28 = scalar_lea.vmem %s1614_s9, 32  ;;  %p1616_p0 = scmp.lt.s32.totalorder %s1165_s19, %s1614_s9 }
  0x1c   : > { %1401 = vmatpush3.msra.mxu1 %v373_v6  ;;  %1385 = vmatprep.subr.mxu0 %v1671_v0  ;;  %v1251_v33 = vld [vmem:[%s2150_s3 + $0xf0] sm:$0xff]  ;;  %v1241_v34 = vld [vmem:[%s2150_s3 + $0xa8] sm:$0xff]  ;;  %v1240_v36 = vld [vmem:[%s2150_s3 + $0xa0] sm:$0xff]  ;;  %p1617_p1 = scmp.lt.s32.totalorder %s1615_s28, %s1609_s29 }
  0x1d   : > { %1402 = vmatprep.subr.mxu1 %v1671_v0  ;;  %1386 = vmatpush3.msra.mxu0 %v278_v10  ;;  %v1250_v35 = vld [vmem:[%s2150_s3 + $0xe8] sm:$0xff]  ;;  %v1249_v37 = vld [vmem:[%s2150_s3 + $0xe0] sm:$0xff]  ;;  %v1239_v38 = vld [vmem:[%s2150_s3 + $0x98] sm:$0xff] }
  0x1e   : > { %1403 = vmatpush3.msra.mxu1 %v372_v9  ;;  %1387 = vmatprep.subr.mxu0 %v1671_v0  ;;  %v1248_v39 = vld [vmem:[%s2150_s3 + $0xd8] sm:$0xff]  ;;  %v1238_v40 = vld [vmem:[%s2150_s3 + $0x90] sm:$0xff]  ;;  %v1237_v42 = vld [vmem:[%s2150_s3 + $0x88] sm:$0xff]  ;;  %p1618_p2 = por %p1617_p1, %p1616_p0 }
  0x1f   : > { %1404 = vmatprep.subr.mxu1 %v1671_v0  ;;  %1388 = vmatpush3.msra.mxu0 %v277_v12  ;;  %v1247_v41 = vld [vmem:[%s2150_s3 + $0xd0] sm:$0xff]  ;;  %v1246_v43 = vld [vmem:[%s2150_s3 + $0xc8] sm:$0xff]  ;;  %v1236_v44 = vld [vmem:[%s2150_s3 + $0x80] sm:$0xff] }
  0x20   : > { %1405 = vmatpush3.msra.mxu1 %v371_v11  ;;  %1389 = vmatprep.subr.mxu0 %v1671_v0  ;;  %v1245_v45 = vld [vmem:[%s2150_s3 + $0xc0] sm:$0xff]  ;;  %v1261_v46 = vld [vmem:[%s2150_s3 + $0x138] sm:$0xff]  ;;  %v1260_v48 = vld [vmem:[%s2150_s3 + $0x130] sm:$0xff]  ;;  %p1619_p3 = pnand %p1618_p2, %p1612_p13 }
  0x21   : > { %1406 = vmatprep.subr.mxu1 %v1671_v0  ;;  %1390 = vmatpush3.msra.mxu0 %v276_v13  ;;  %v1270_v47 = vld [vmem:[%s2150_s3 + $0x178] sm:$0xff]  ;;  %v1269_v49 = vld [vmem:[%s2150_s3 + $0x170] sm:$0xff]  ;;  %v1259_v50 = vld [vmem:[%s2150_s3 + $0x128] sm:$0xff] }
  0x22   : > { %1392 = vmatmul.mubr.msk.f32.vlgmr.msra.gmra.mxu0 %vm288_vm2, %v281_v14  ;;  %1413 = vmatprep.subr.mxu0 %v1671_v0  ;;  %v1268_v51 = vld [vmem:[%s2150_s3 + $0x168] sm:$0xff]  ;;  %v1258_v52 = vld [vmem:[%s2150_s3 + $0x120] sm:$0xff]  ;;  %v1257_v54 = vld [vmem:[%s2150_s3 + $0x118] sm:$0xff] }
  0x23   : > { %1414 = vmatpush3.msra.mxu0 %v1234_v15  ;;  %1429 = vmatprep.mubr.msk.f32.mxu0 %vm1672_vm0, %v1671_v0  ;;  %v1267_v53 = vld [vmem:[%s2150_s3 + $0x160] sm:$0xff]  ;;  %v1266_v55 = vld [vmem:[%s2150_s3 + $0x158] sm:$0xff]  ;;  %v1256_v56 = vld [vmem:[%s2150_s3 + $0x110] sm:$0xff] }
  0x24   : > { %1415 = vmatprep.subr.mxu0 %v1671_v0  ;;  %1407 = vmatpush3.msra.mxu1 %v370_v21  ;;  %v1265_v57 = vld [vmem:[%s2150_s3 + $0x150] sm:$0xff]  ;;  %v1255_v58 = vld [vmem:[%s2150_s3 + $0x108] sm:$0xff]  ;;  %v1254_v60 = vld [vmem:[%s2150_s3 + $0x100] sm:$0xff] }
  0x25   : > { %1416 = vmatpush3.msra.mxu0 %v1233_v16  ;;  %1408 = vmatprep.subr.mxu1 %v1671_v0  ;;  %v1264_v59 = vld [vmem:[%s2150_s3 + $0x148] sm:$0xff]  ;;  %v1263_v61 = vld [vmem:[%s2150_s3 + $0x140] sm:$0xff]  ;;  %v1279_v62 = vld [vmem:[%s2150_s3 + $0x1b8] sm:$0xff] }
  0x26   : > { %1417 = vmatprep.subr.mxu0 %v1671_v0  ;;  %1409 = vmatpush3.msra.mxu1 %v369_v23  ;;  %v1288_v63 = vld [vmem:[%s2150_s3 + $0x1f8] sm:$0xff]  ;;  %v1278_v1 = vld [vmem:[%s2150_s3 + $0x1b0] sm:$0xff]  ;;  %v1277_v3 = vld [vmem:[%s2150_s3 + $0x1a8] sm:$0xff] }
  0x27   : > { %1418 = vmatpush3.msra.mxu0 %v1232_v17  ;;  %1432 = vmatprep.subr.mxu1 %v1671_v0  ;;  %v1287_v2 = vld [vmem:[%s2150_s3 + $0x1f0] sm:$0xff]  ;;  %v1286_v4 = vld [vmem:[%s2150_s3 + $0x1e8] sm:$0xff]  ;;  %v1276_v5 = vld [vmem:[%s2150_s3 + $0x1a0] sm:$0xff] }
  0x28   : > { %1419 = vmatprep.subr.mxu0 %v1671_v0  ;;  %v1285_v6 = vld [vmem:[%s2150_s3 + $0x1e0] sm:$0xff]  ;;  %v1275_v7 = vld [vmem:[%s2150_s3 + $0x198] sm:$0xff]  ;;  %v1274_v9 = vld [vmem:[%s2150_s3 + $0x190] sm:$0xff] }
  0x29   : > { %1420 = vmatpush3.msra.mxu0 %v1231_v18  ;;  %v1284_v8 = vld [vmem:[%s2150_s3 + $0x1d8] sm:$0xff]  ;;  %v1283_v10 = vld [vmem:[%s2150_s3 + $0x1d0] sm:$0xff]  ;;  %v1273_v11 = vld [vmem:[%s2150_s3 + $0x188] sm:$0xff] }
  0x2a   : > { %1421 = vmatprep.subr.mxu0 %v1671_v0  ;;  %v1282_v12 = vld [vmem:[%s2150_s3 + $0x1c8] sm:$0xff]  ;;  %v1272_v13 = vld [vmem:[%s2150_s3 + $0x180] sm:$0xff]  ;;  %v1065_v15 = vld [vmem:[%s2152_s5 + $0x38] sm:$0xff] }
  0x2b   : > { %1422 = vmatpush3.msra.mxu0 %v1230_v19  ;;  %v1281_v14 = vld [vmem:[%s2150_s3 + $0x1c0] sm:$0xff]  ;;  %v1064_v16 = vld [vmem:[%s2152_s5 + $0x30] sm:$0xff]  ;;  %v1063_v17 = vld [vmem:[%s2152_s5 + $0x28] sm:$0xff] }
  0x2c   : > { %1423 = vmatprep.subr.mxu0 %v1671_v0  ;;  %v1062_v18 = vld [vmem:[%s2152_s5 + $0x20] sm:$0xff]  ;;  %v1061_v19 = vld [vmem:[%s2152_s5 + $0x18] sm:$0xff]  ;;  %v1059_v21 = vld [vmem:[%s2152_s5 + $0x8] sm:$0xff] }
  0x2d   : > { %1424 = vmatpush3.msra.mxu0 %v1229_v20  ;;  %v1060_v20 = vld [vmem:[%s2152_s5 + $0x10] sm:$0xff] }
  0x2e   : > { %1425 = vmatprep.subr.mxu0 %v1671_v0 }
  0x2f   : > { %1426 = vmatpush3.msra.mxu0 %v1228_v22  ;;  %v1058_v22 = vld [vmem:[%s2152_s5] sm:$0xff] }
  0x30   : > { %1427 = vmatprep.subr.mxu0 %v1671_v0 }
  0x31   : > { %1428 = vmatpush3.msra.mxu0 %v1227_v24 }
  0x32   : > { %1451 = vmatprep.subr.mxu0 %v1671_v0 }
  0x91   : > { %v286_v25 = vpop.permute.xlu0 %285 }
  0xe2   : > { %v362_v26 = vpop.f32.mrf.mxu0 }
  0xe3   : > { %v363_v27 = vadd.f32 %v362_v26, %v286_v25 }
  0xe4   : > { %v1393_v28 = vpop.f32.mrf.mxu0 }
  0xe5   : > { %v1851_v29 = vmax.f32 %v363_v27, 0.0 }
  0xe7   : > { %1411 = vmatmul.mubr.msk.f32.vlgmr.msra.gmra.mxu1 %vm377_vm3, %v1851_v29  ;;  %1430 = vmatmul.mubr.msk.f32.vlgmr.msra.gmra.mxu0 %vm377_vm3, %v1851_v29 }
  0xe8   : > { %1433 = vmatpush3.msra.mxu1 %v1243_v30  ;;  %1452 = vmatpush3.msra.mxu0 %v1252_v31  ;;  %v367_v31 = vlaneseq }
  0xe9   : > { %1434 = vmatprep.subr.mxu1 %v1671_v0  ;;  %1453 = vmatprep.subr.mxu0 %v1671_v0 }
  0xea   : > { %1435 = vmatpush3.msra.mxu1 %v1242_v32  ;;  %1454 = vmatpush3.msra.mxu0 %v1251_v33  ;;  %v368_v32 = vshrl.u32 %v367_v31, 7 }
  0xeb   : > { %1436 = vmatprep.subr.mxu1 %v1671_v0  ;;  %1455 = vmatprep.subr.mxu0 %v1671_v0 }
  0xec   : > { %1437 = vmatpush3.msra.mxu1 %v1241_v34  ;;  %1456 = vmatpush3.msra.mxu0 %v1250_v35  ;;  %vm451_vm4 = vcmp.eq.s32.totalorder %v368_v32, 0  ;;  %vm535_vm5 = vcmp.eq.s32.totalorder %v368_v32, 1  ;;  %vm619_vm6 = vcmp.eq.s32.totalorder %v368_v32, 2  ;;  %vm703_vm7 = vcmp.eq.s32.totalorder %v368_v32, 3 }
  0xed   : > { %1438 = vmatprep.subr.mxu1 %v1671_v0  ;;  %1457 = vmatprep.subr.mxu0 %v1671_v0  ;;  %vm787_vm8 = vcmp.eq.s32.totalorder %v368_v32, 4  ;;  %vm871_vm9 = vcmp.eq.s32.totalorder %v368_v32, 5  ;;  %vm955_vm10 = vcmp.eq.s32.totalorder %v368_v32, 6  ;;  %vm1039_vm11 = vcmp.eq.s32.totalorder %v368_v32, 7 }
  0xee   : > { %1439 = vmatpush3.msra.mxu1 %v1240_v36  ;;  %1458 = vmatpush3.msra.mxu0 %v1249_v37 }
  0xef   : > { %1440 = vmatprep.subr.mxu1 %v1671_v0  ;;  %1459 = vmatprep.subr.mxu0 %v1671_v0 }
  0xf0   : > { %1441 = vmatpush3.msra.mxu1 %v1239_v38  ;;  %1460 = vmatpush3.msra.mxu0 %v1248_v39 }
  0xf1   : > { %1442 = vmatprep.subr.mxu1 %v1671_v0  ;;  %1461 = vmatprep.subr.mxu0 %v1671_v0 }
  0xf2   : > { %1443 = vmatpush3.msra.mxu1 %v1238_v40  ;;  %1462 = vmatpush3.msra.mxu0 %v1247_v41 }
  0xf3   : > { %1444 = vmatprep.subr.mxu1 %v1671_v0  ;;  %1463 = vmatprep.subr.mxu0 %v1671_v0 }
  0xf4   : > { %1445 = vmatpush3.msra.mxu1 %v1237_v42  ;;  %1464 = vmatpush3.msra.mxu0 %v1246_v43 }
  0xf5   : > { %1446 = vmatprep.subr.mxu1 %v1671_v0  ;;  %1465 = vmatprep.subr.mxu0 %v1671_v0 }
  0xf6   : > { %1447 = vmatpush3.msra.mxu1 %v1236_v44  ;;  %1448 = vmatprep.mubr.msk.f32.mxu1 %vm1672_vm0, %v1671_v0 }
  0xf7   : > { %1466 = vmatpush3.msra.mxu0 %v1245_v45  ;;  %1467 = vmatprep.mubr.msk.f32.mxu0 %vm1672_vm0, %v1671_v0 }
  0xf8   : > { %1449 = vmatmul.mubr.msk.f32.vlgmr.msra.gmra.mxu1 %vm377_vm3, %v1851_v29  ;;  %1468 = vmatmul.mubr.msk.f32.vlgmr.msra.gmra.mxu0 %vm377_vm3, %v1851_v29 }
  0xf9   : > { %1470 = vmatprep.subr.mxu1 %v1671_v0  ;;  %1489 = vmatprep.subr.mxu0 %v1671_v0 }
  0xfa   : > { %1471 = vmatpush3.msra.mxu1 %v1261_v46  ;;  %1490 = vmatpush3.msra.mxu0 %v1270_v47 }
  0xfb   : > { %1472 = vmatprep.subr.mxu1 %v1671_v0  ;;  %1491 = vmatprep.subr.mxu0 %v1671_v0 }
  0xfc   : > { %1473 = vmatpush3.msra.mxu1 %v1260_v48  ;;  %1492 = vmatpush3.msra.mxu0 %v1269_v49 }
  0xfd   : > { %1474 = vmatprep.subr.mxu1 %v1671_v0  ;;  %1493 = vmatprep.subr.mxu0 %v1671_v0 }
  0xfe   : > { %1475 = vmatpush3.msra.mxu1 %v1259_v50  ;;  %1494 = vmatpush3.msra.mxu0 %v1268_v51 }
  0xff   : > { %1476 = vmatprep.subr.mxu1 %v1671_v0  ;;  %1495 = vmatprep.subr.mxu0 %v1671_v0 }
 0x100   : > { %1477 = vmatpush3.msra.mxu1 %v1258_v52  ;;  %1496 = vmatpush3.msra.mxu0 %v1267_v53 }
 0x101   : > { %1478 = vmatprep.subr.mxu1 %v1671_v0  ;;  %1497 = vmatprep.subr.mxu0 %v1671_v0 }
 0x102   : > { %1479 = vmatpush3.msra.mxu1 %v1257_v54  ;;  %1498 = vmatpush3.msra.mxu0 %v1266_v55 }
 0x103   : > { %1480 = vmatprep.subr.mxu1 %v1671_v0  ;;  %1499 = vmatprep.subr.mxu0 %v1671_v0 }
 0x104   : > { %1481 = vmatpush3.msra.mxu1 %v1256_v56  ;;  %1500 = vmatpush3.msra.mxu0 %v1265_v57 }
 0x105   : > { %1482 = vmatprep.subr.mxu1 %v1671_v0  ;;  %1501 = vmatprep.subr.mxu0 %v1671_v0 }
 0x106   : > { %1483 = vmatpush3.msra.mxu1 %v1255_v58  ;;  %1502 = vmatpush3.msra.mxu0 %v1264_v59 }
 0x107   : > { %1484 = vmatprep.subr.mxu1 %v1671_v0  ;;  %1503 = vmatprep.subr.mxu0 %v1671_v0 }
 0x108   : > { %1485 = vmatpush3.msra.mxu1 %v1254_v60  ;;  %1486 = vmatprep.mubr.msk.f32.mxu1 %vm1672_vm0, %v1671_v0 }
 0x109   : > { %1504 = vmatpush3.msra.mxu0 %v1263_v61  ;;  %1505 = vmatprep.mubr.msk.f32.mxu0 %vm1672_vm0, %v1671_v0  ;;  %v1051_v61 = vld [vmem:[%s2151_s4] sm:$0x1] }
 0x10a   : > { %1487 = vmatmul.mubr.msk.f32.vlgmr.msra.gmra.mxu1 %vm377_vm3, %v1851_v29  ;;  %1506 = vmatmul.mubr.msk.f32.vlgmr.msra.gmra.mxu0 %vm377_vm3, %v1851_v29 }
 0x10b   : > { %1508 = vmatprep.subr.mxu1 %v1671_v0  ;;  %1527 = vmatprep.subr.mxu0 %v1671_v0 }
 0x10c   : > { %1509 = vmatpush3.msra.mxu1 %v1279_v62  ;;  %1528 = vmatpush3.msra.mxu0 %v1288_v63 }
 0x10d   : > { %1510 = vmatprep.subr.mxu1 %v1671_v0  ;;  %1529 = vmatprep.subr.mxu0 %v1671_v0 }
 0x10e   : > { %1511 = vmatpush3.msra.mxu1 %v1278_v1  ;;  %1530 = vmatpush3.msra.mxu0 %v1287_v2  ;;  %v1056_v1 = vsub.s32 0, %v368_v32 }
 0x10f   : > { %1512 = vmatprep.subr.mxu1 %v1671_v0  ;;  %1531 = vmatprep.subr.mxu0 %v1671_v0 }
 0x110   : > { %1513 = vmatpush3.msra.mxu1 %v1277_v3  ;;  %1532 = vmatpush3.msra.mxu0 %v1286_v4 }
 0x111   : > { %1514 = vmatprep.subr.mxu1 %v1671_v0  ;;  %1533 = vmatprep.subr.mxu0 %v1671_v0 }
 0x112   : > { %1515 = vmatpush3.msra.mxu1 %v1276_v5  ;;  %1534 = vmatpush3.msra.mxu0 %v1285_v6 }
 0x113   : > { %1516 = vmatprep.subr.mxu1 %v1671_v0  ;;  %1535 = vmatprep.subr.mxu0 %v1671_v0 }
 0x114   : > { %1517 = vmatpush3.msra.mxu1 %v1275_v7  ;;  %1536 = vmatpush3.msra.mxu0 %v1284_v8 }
 0x115   : > { %1518 = vmatprep.subr.mxu1 %v1671_v0  ;;  %1537 = vmatprep.subr.mxu0 %v1671_v0 }
 0x116   : > { %1519 = vmatpush3.msra.mxu1 %v1274_v9  ;;  %1538 = vmatpush3.msra.mxu0 %v1283_v10 }
 0x117   : > { %1520 = vmatprep.subr.mxu1 %v1671_v0  ;;  %1539 = vmatprep.subr.mxu0 %v1671_v0 }
 0x118   : > { %1521 = vmatpush3.msra.mxu1 %v1273_v11  ;;  %1540 = vmatpush3.msra.mxu0 %v1282_v12  ;;  %v1147_v12 = vld [vmem:[%s2153_s6] sm:$0x1] }
 0x119   : > { %1522 = vmatprep.subr.mxu1 %v1671_v0  ;;  %1541 = vmatprep.subr.mxu0 %v1671_v0 }
 0x11a   : > { %1523 = vmatpush3.msra.mxu1 %v1272_v13  ;;  %1524 = vmatprep.mubr.msk.f32.mxu1 %vm1672_vm0, %v1671_v0 }
 0x11b   : > { %1542 = vmatpush3.msra.mxu0 %v1281_v14  ;;  %1543 = vmatprep.mubr.msk.f32.mxu0 %vm1672_vm0, %v1671_v0 }
 0x11c   : > { %1525 = vmatmul.mubr.msk.f32.vlgmr.msra.gmra.mxu1 %vm377_vm3, %v1851_v29  ;;  %1544 = vmatmul.mubr.msk.f32.vlgmr.msra.gmra.mxu0 %vm377_vm3, %v1851_v29 }
 0x11d   : > { %1546 = vmatprep.subr.mxu1 %v1671_v0  ;;  %1562 = vmatprep.mubr.msk.f32.mxu1 %vm1672_vm0, %v1671_v0 }
 0x11e   : > { %1547 = vmatpush3.msra.mxu1 %v1065_v15 }
 0x11f   : > { %1548 = vmatprep.subr.mxu1 %v1671_v0 }
 0x120   : > { %1549 = vmatpush3.msra.mxu1 %v1064_v16 }
 0x121   : > { %1550 = vmatprep.subr.mxu1 %v1671_v0 }
 0x122   : > { %1551 = vmatpush3.msra.mxu1 %v1063_v17 }
 0x123   : > { %1552 = vmatprep.subr.mxu1 %v1671_v0 }
 0x124   : > { %1553 = vmatpush3.msra.mxu1 %v1062_v18 }
 0x125   : > { %1554 = vmatprep.subr.mxu1 %v1671_v0 }
 0x126   : > { %1555 = vmatpush3.msra.mxu1 %v1061_v19 }
 0x127   : > { %1556 = vmatprep.subr.mxu1 %v1671_v0 }
 0x128   : > { %1557 = vmatpush3.msra.mxu1 %v1060_v20 }
 0x129   : > { %1558 = vmatprep.subr.mxu1 %v1671_v0 }
 0x12a   : > { %1559 = vmatpush3.msra.mxu1 %v1059_v21 }
 0x12b   : > { %1560 = vmatprep.subr.mxu1 %v1671_v0 }
 0x12c   : > { %1561 = vmatpush3.msra.mxu1 %v1058_v22 }
 0x1a7   : > { %v447_v23 = vpop.f32.mrf.mxu1  ;;  %v531_v24 = vpop.f32.mrf.mxu0 }
 0x1a8   : > { %v454_v37 = vsel %vm451_vm4, %v447_v23, 0.0  ;;  %v538_v0 = vsel %vm535_vm5, %v531_v24, 0.0 }
 0x1a9   : > { %v1412_v25 = vpop.f32.mrf.mxu1  ;;  %v1431_v26 = vpop.f32.mrf.mxu0  ;;  %v539_v39 = vadd.f32 %v538_v0, %v454_v37 }
 0x1b8   : > { %v615_v27 = vpop.f32.mrf.mxu1  ;;  %v699_v28 = vpop.f32.mrf.mxu0 }
 0x1b9   : > { %v622_v38 = vsel %vm619_vm6, %v615_v27, 0.0  ;;  %v706_v41 = vsel %vm703_vm7, %v699_v28, 0.0 }
 0x1ba   : > { %v1450_v29 = vpop.f32.mrf.mxu1  ;;  %v1469_v30 = vpop.f32.mrf.mxu0  ;;  %v623_v40 = vadd.f32 %v622_v38, %v539_v39 }
 0x1bc   : > { %v707_v43 = vadd.f32 %v706_v41, %v623_v40 }
 0x1ca   : > { %v783_v33 = vpop.f32.mrf.mxu1  ;;  %v867_v34 = vpop.f32.mrf.mxu0 }
 0x1cb   : > { %v790_v42 = vsel %vm787_vm8, %v783_v33, 0.0  ;;  %v874_v45 = vsel %vm871_vm9, %v867_v34, 0.0 }
 0x1cc   : > { %v1488_v35 = vpop.f32.mrf.mxu1  ;;  %v1507_v36 = vpop.f32.mrf.mxu0  ;;  %v791_v44 = vadd.f32 %v790_v42, %v707_v43 }
 0x1ce   : > { %v875_v46 = vadd.f32 %v874_v45, %v791_v44 }
 0x1dc   : > { %v951_v47 = vpop.f32.mrf.mxu1  ;;  %v1035_v48 = vpop.f32.mrf.mxu0 }
 0x1dd   : > { %v958_v49 = vsel %vm955_vm10, %v951_v47, 0.0  ;;  %v1042_v53 = vsel %vm1039_vm11, %v1035_v48, 0.0 }
 0x1de   : > { %v959_v50 = vadd.f32 %v958_v49, %v875_v46  ;;  %v1526_v51 = vpop.f32.mrf.mxu1  ;;  %v1545_v52 = vpop.f32.mrf.mxu0 }
 0x1e0   : > { %v1043_v54 = vadd.f32 %v1042_v53, %v959_v50 }
 0x1e2   : > { %v1044_v55 = vsel %vm377_vm3, %v1043_v54, 0.0 }
 0x1e3   : > { %v1045_v56 = vrot.slane %v1044_v55, 4 }
 0x1e5   : > { %v1046_v57 = vadd.f32 %v1045_v56, %v1044_v55 }
 0x1e7   : > { %v1047_v58 = vrot.slane %v1046_v57, 2 }
 0x1e9   : > { %v1048_v59 = vadd.f32 %v1047_v58, %v1046_v57 }
 0x1eb   : > { %v1049_v60 = vrot.slane %v1048_v59, 1 }
 0x1ed   : > { %v1050_v62 = vadd.f32 %v1049_v60, %v1048_v59 }
 0x1ef   : > { %v1052_v63 = vadd.f32 %v1051_v61, %v1050_v62 }
 0x1f1   : > { %v1053_v2 = vmax.f32 %v1052_v63, 0.0 }
 0x1f3   : > { %v1057_v3 = vrot.slane %v1053_v2, %v1056_v1 }
 0x1f5   : > { %1563 = vmatmul.mubr.msk.f32.vlgmr.msra.gmra.mxu1 %vm377_vm3, %v1057_v3 }
 0x2b5   : > { %v1135_v4 = vpop.f32.mrf.mxu1 }
 0x2b6   : > { %v1140_v5 = vsel %vm1139_vm12, %v1135_v4, -inf }
 0x2b7   : > { %v1141_v6 = vrot.slane %v1140_v5, 4  ;;  %v1564_v7 = vpop.f32.mrf.mxu1 }
 0x2b9   : > { %v1142_v8 = vmax.f32 %v1140_v5, %v1141_v6 }
 0x2bb   : > { %v1143_v9 = vrot.slane %v1142_v8, 2 }
 0x2bd   : > { %v1144_v10 = vmax.f32 %v1142_v8, %v1143_v9 }
 0x2bf   : > { %v1145_v11 = vrot.slane %v1144_v10, 1 }
 0x2c1   : > { %v1146_v13 = vmax.f32 %v1144_v10, %v1145_v11 }
 0x2c3   : > { %v1148_v14 = vadd.f32 %v1147_v12, %v1146_v13 }
 0x2c5   : > { %1150 = vst.msk [vmem:[%s270_s18] sm:$0x1] %vm1149_vm13, %v1148_v14 }
 0x2c6   : > { %1622 = shalt.err (!%p1619_p3)
}
 0x2c7   : > { %s1623_s13 = scalar_lea.hbm %s1162_s22, 16  ;;  %s1627_s16 = scalar_lea.hbm %s2154_s7, 32 }
 0x2c8   : > { %p1624_p4 = scmp.ne.s32.totalorder %s1162_s22, %s1623_s13  ;;  %p1628_p9 = scmp.lt.s32.totalorder %s1162_s22, %s2154_s7 }
 0x2c9   : > { %p1629_p10 = scmp.lt.s32.totalorder %s1627_s16, %s1623_s13 }
 0x2ca   : > { %p1625_p7 = pnand %p1624_p4, %p1753_p5 }
 0x2cb   : > { %p1630_p11 = por %p1629_p10, %p1628_p9 }
 0x2cc   : > { %p1626_p8 = pneg %p1625_p7 }
 0x2ce   : > { %p1631_p12 = pnand %p1630_p11, %p1626_p8 }
 0x2d0   : > { %1634 = shalt.err (!%p1631_p12)
}
 0x2d1   : > { %1566 = dma.vmem_to_hbm [thread:$0]  (%p1753_p5), %s1165_s19, 16, %s1162_s22, %s1152_s23  }
 0x2d2 PF: > { %p1572_p13 = scmp.ge.s32.totalorder %s1669_s27, 2  ;;  %s1176_s20 = sand.u32 1, %s1657_s24  }
 0x2d3   : > { %s1177_s21 = scalar_lea.sflag [#allocation3], %s1176_s20 }
 0x2d4   : > { %p1569_p0 = pnand %p1572_p13, %p1757_p6 }
 0x2d6   : > { %p1570_p1 = pneg %p1569_p0 }
 0x2d8   : > { %1652 = dma.done.wait (%p1570_p1), %s1177_s21, 16  }
 0x2d9   : > { %1654 = vsyncadd (%p1570_p1), %s1177_s21, 4294967280  ;;  %p17_p2 = scmp.ge.s32.totalorder %s1740_s30, 4   ;;  %s2157_s24 = smov %s1661_s25 }
 0x2da   : > { %s2158_s25 = smov %s1665_s26  ;;  %s2159_s26 = smov %s1751_s10 }
 0x2db   : > { %s2160_s27 = smov %s1740_s30  ;;  %19 = sbr.rel (!%p17_p2) target bundleno = 3 (0x3), region = 90 }
 0x2e0   :  { %1181 = vsyncpa [#allocation3], 1 }
 0x2e1   :  { %1183 = vsyncpa [#allocation3 + $0x1], 1 }

</bundles_post_ra>
